<compile_context>
chip_gen: v7x
topology: tpu7x:2x2x1
jax: 0.10.0
libtpu: 0.0.40
codegen_flags: <defaults>
</compile_context>

<pallas_src>
import functools
import math

import jax
import jax.numpy as jnp
from jax import lax
from jax.experimental import pallas as pl
from jax.experimental.pallas import tpu as pltpu


# --------------------------------------------------------------------------------------
# Kernel 1: fused Q|K|V projection + head re-layout.
#   in : x [tn, dim_in] f32, w_all [dim_in, 3*dim_V] bf16, b_all [1, 3*dim_V] f32
#   out: q_heads [H, tn, ds] f32, k_heads / v_heads [H, tn, ds] bf16
# --------------------------------------------------------------------------------------
def _qkv_proj_kernel(x_ref, w_ref, b_ref, q_ref, k_ref, v_ref, *, num_heads, dim_V):
    ds = dim_V // num_heads
    x = x_ref[...].astype(jnp.bfloat16)
    qkv = jnp.dot(x, w_ref[...], preferred_element_type=jnp.float32) + b_ref[...]  # [tn, 3*dim_V] f32
    # torch.cat(T.split(ds, 1), 0): head hh's feature slice -> its own leading index.
    for hh in range(num_heads):  # static python loop, one-time layout cost
        q_ref[hh] = qkv[:, hh * ds:(hh + 1) * ds]
        k_ref[hh] = qkv[:, dim_V + hh * ds: dim_V + (hh + 1) * ds].astype(jnp.bfloat16)
        v_ref[hh] = qkv[:, 2 * dim_V + hh * ds: 2 * dim_V + (hh + 1) * ds].astype(jnp.bfloat16)


# --------------------------------------------------------------------------------------
# Kernel 2: cross-head attention with online softmax + fused fc_o/ReLU/residual epilogue.
#   grid = (qb, h, hk, rb):  query-row block, query head, key head, key-row block.
#   Queries of head h attend over the keys of ALL heads (hk x rb sweeps all H*N keys).
# --------------------------------------------------------------------------------------
def _attn_kernel(q_ref, k_ref, v_ref, wo_ref, bo_ref, o_ref,
                 m_sc, l_sc, acc_sc, o_heads, *, num_heads, dim_V):
    h = pl.program_id(1)
    hk = pl.program_id(2)
    rb = pl.program_id(3)
    last_hk = pl.num_programs(2) - 1
    last_rb = pl.num_programs(3) - 1
    scale = 1.0 / math.sqrt(dim_V)

    # ---- init online-softmax state at the first key block of each (qb, h) ----
    @pl.when(jnp.logical_and(hk == 0, rb == 0))
    def _():
        m_sc[...] = jnp.full_like(m_sc, -jnp.inf)
        l_sc[...] = jnp.zeros_like(l_sc)
        acc_sc[...] = jnp.zeros_like(acc_sc)

    q = q_ref[0]                                   # [tq, ds] f32 (exact, for residual)
    k = k_ref[0]                                   # [tk, ds] bf16
    v = v_ref[0]                                   # [tk, ds] bf16

    # scores for this key block only: [tq, tk]
    s = lax.dot_general(q.astype(jnp.bfloat16), k,
                        (((1,), (1,)), ((), ())),
                        preferred_element_type=jnp.float32) * scale

    m_prev = m_sc[...]
    m_new = jnp.maximum(m_prev, jnp.max(s, axis=1, keepdims=True))
    alpha = jnp.exp(m_prev - m_new)                # f32 softmax math
    p = jnp.exp(s - m_new)                         # unnormalized probabilities
    l_sc[...] = alpha * l_sc[...] + jnp.sum(p, axis=1, keepdims=True)
    acc_sc[...] = alpha * acc_sc[...] + jnp.dot(p.astype(jnp.bfloat16), v,
                                                preferred_element_type=jnp.float32)
    m_sc[...] = m_new

    last_key_step = jnp.logical_and(hk == last_hk, rb == last_rb)

    # ---- finalize this head: normalize once on the [tq, ds] accumulator + residual ----
    @pl.when(last_key_step)
    def _():
        o_heads[h] = q + acc_sc[...] / l_sc[...]

    # ---- epilogue at the last head: re-cat heads + fc_o + relu + residual, store ----
    @pl.when(jnp.logical_and(h == pl.num_programs(1) - 1, last_key_step))
    def _():
        o_cat = jnp.concatenate([o_heads[hh] for hh in range(num_heads)], axis=1)  # [tq, dim_V]
        o_lin = jnp.dot(o_cat.astype(jnp.bfloat16), wo_ref[...],
                        preferred_element_type=jnp.float32) + bo_ref[...]
        o_ref[...] = (o_cat + jnp.maximum(o_lin, 0.0)).astype(o_ref.dtype)


def sab_forward(x, params, *, num_heads, block_q=128, block_k=128, block_rows=512):
    """x: [N, dim_in] f32. params: pre-transposed [in, out] weights, [1, out] biases."""
    N, dim_in = x.shape
    dim_V = params["wq"].shape[1]
    assert dim_V % num_heads == 0, "dim_V must be divisible by num_heads"
    ds = dim_V // num_heads

    tq = N if N <= block_q else block_q          # query-row tile
    tk = N if N <= block_k else block_k          # key-row tile (per key head)
    tn = N if N <= block_rows else block_rows    # projection row tile
    assert N % tq == 0 and N % tk == 0 and N % tn == 0, "N must tile evenly"

    # Wrapper-side layout plumbing only (no compute): fused bf16 projection weights.
    w_all = jnp.concatenate([params["wq"], params["wk"], params["wv"]], axis=1).astype(jnp.bfloat16)
    b_all = jnp.concatenate([params["bq"], params["bk"], params["bv"]], axis=1)   # f32
    wo = params["wo"].astype(jnp.bfloat16)
    bo = params["bo"]                                                             # f32

    # ---------------- pass 1: Q/K/V projection (parallel over row blocks) ----------------
    q_heads, k_heads, v_heads = pl.pallas_call(
        functools.partial(_qkv_proj_kernel, num_heads=num_heads, dim_V=dim_V),
        out_shape=(
            jax.ShapeDtypeStruct((num_heads, N, ds), jnp.float32),
            jax.ShapeDtypeStruct((num_heads, N, ds), jnp.bfloat16),
            jax.ShapeDtypeStruct((num_heads, N, ds), jnp.bfloat16),
        ),
        grid_spec=pltpu.PrefetchScalarGridSpec(
            num_scalar_prefetch=0,
            grid=(N // tn,),
            in_specs=[
                pl.BlockSpec((tn, dim_in), lambda i: (i, 0)),
                pl.BlockSpec((dim_in, 3 * dim_V), lambda i: (0, 0)),
                pl.BlockSpec((1, 3 * dim_V), lambda i: (0, 0)),
            ],
            out_specs=[
                pl.BlockSpec((num_heads, tn, ds), lambda i: (0, i, 0)),
                pl.BlockSpec((num_heads, tn, ds), lambda i: (0, i, 0)),
                pl.BlockSpec((num_heads, tn, ds), lambda i: (0, i, 0)),
            ],
        ),
        compiler_params=pltpu.CompilerParams(
            dimension_semantics=("parallel",),
            vmem_limit_bytes=32 * 1024 * 1024,
        ),
    )(x, w_all, b_all)

    # ---------------- pass 2: cross-head attention + fused epilogue ----------------
    out = pl.pallas_call(
        functools.partial(_attn_kernel, num_heads=num_heads, dim_V=dim_V),
        out_shape=jax.ShapeDtypeStruct((N, dim_V), jnp.float32),
        grid_spec=pltpu.PrefetchScalarGridSpec(
            num_scalar_prefetch=0,
            grid=(N // tq, num_heads, num_heads, N // tk),
            in_specs=[
                pl.BlockSpec((1, tq, ds), lambda qb, h, hk, rb: (h, qb, 0)),    # Q_ head block
                pl.BlockSpec((1, tk, ds), lambda qb, h, hk, rb: (hk, rb, 0)),   # K_ key block (bf16)
                pl.BlockSpec((1, tk, ds), lambda qb, h, hk, rb: (hk, rb, 0)),   # V_ key block (bf16)
                pl.BlockSpec((dim_V, dim_V), lambda qb, h, hk, rb: (0, 0)),     # Wo (bf16, resident)
                pl.BlockSpec((1, dim_V), lambda qb, h, hk, rb: (0, 0)),         # bo
            ],
            out_specs=pl.BlockSpec((tq, dim_V), lambda qb, h, hk, rb: (qb, 0)),
            scratch_shapes=[
                pltpu.VMEM((tq, 1), jnp.float32),               # running max
                pltpu.VMEM((tq, 1), jnp.float32),               # running denominator
                pltpu.VMEM((tq, ds), jnp.float32),              # PV accumulator (unnormalized)
                pltpu.VMEM((num_heads, tq, ds), jnp.float32),   # per-head outputs of this qb
            ],
        ),
        compiler_params=pltpu.CompilerParams(
            # No in-kernel shared-state fill anymore -> query-block axis is truly parallel
            # (v7x megacore); head / key axes carry softmax + epilogue state -> arbitrary.
            dimension_semantics=("parallel", "arbitrary", "arbitrary", "arbitrary"),
            vmem_limit_bytes=32 * 1024 * 1024,
        ),
    )(q_heads, k_heads, v_heads, wo, bo)
    return out


def init_params(key, dim_in, dim_out):
    """Deterministic synthetic init (PyTorch-Linear-like uniform), pre-transposed [in, out]."""
    ks = jax.random.split(key, 8)

    def lin(kw, kb, fan_in, fan_out):
        bound = 1.0 / math.sqrt(fan_in)
        w = jax.random.uniform(kw, (fan_in, fan_out), jnp.float32, -bound, bound)
        b = jax.random.uniform(kb, (1, fan_out), jnp.float32, -bound, bound)
        return w, b

    wq, bq = lin(ks[0], ks[1], dim_in, dim_out)
    wk, bk = lin(ks[2], ks[3], dim_in, dim_out)
    wv, bv = lin(ks[4], ks[5], dim_in, dim_out)
    wo, bo = lin(ks[6], ks[7], dim_out, dim_out)
    return dict(wq=wq, bq=bq, wk=wk, bk=bk, wv=wv, bv=bv, wo=wo, bo=bo)


def sab_reference(x, params, *, num_heads):
    """Pure-JAX f32 reference mirroring the PyTorch forward, for verification."""
    dim_V = params["wq"].shape[1]
    ds = dim_V // num_heads
    N = x.shape[0]
    Q = x @ params["wq"] + params["bq"]
    K = x @ params["wk"] + params["bk"]
    V = x @ params["wv"] + params["bv"]
    cat_split = lambda T: jnp.concatenate(
        [T[:, h * ds:(h + 1) * ds] for h in range(num_heads)], axis=0)
    Q_, K_, V_ = cat_split(Q), cat_split(K), cat_split(V)
    A = jax.nn.softmax(Q_ @ K_.T / math.sqrt(dim_V), axis=1)
    O_ = Q_ + A @ V_
    O = jnp.concatenate([O_[h * N:(h + 1) * N, :] for h in range(num_heads)], axis=1)
    return O + jax.nn.relu(O @ params["wo"] + params["bo"])


if __name__ == "__main__":
    N, dim_in, dim_out, num_heads = 8, 16, 32, 4

    key = jax.random.PRNGKey(0)
    kx, kp = jax.random.split(key)
    x = jax.random.normal(kx, (N, dim_in), dtype=jnp.float32)
    params = init_params(kp, dim_in, dim_out)

    out = sab_forward(x, params, num_heads=num_heads)
    out = jax.block_until_ready(out)

    ref = sab_reference(x, params, num_heads=num_heads)
    assert out.shape == (N, dim_out)
    max_err = jnp.max(jnp.abs(out - ref))
    # bf16 MXU operands (weights / K / V / probabilities) vs. f32 reference -> loose
    # but bug-catching tolerance; the softmax normalization itself is exact.
    assert jnp.allclose(out, ref, atol=5e-2, rtol=5e-2), \
        f"mismatch vs reference (max abs err {max_err})"

    print("KERNEL_OK")
</pallas_src>

<mosaic_0001>
module attributes {stable_mosaic.version = 11 : i64} {
  func.func @_qkv_proj_kernel(%arg0: i32, %arg1: memref<8x16xf32, #tpu.memory_space<vmem>>, %arg2: memref<16x96xbf16, #tpu.memory_space<vmem>>, %arg3: memref<1x96xf32, #tpu.memory_space<vmem>>, %arg4: memref<4x8x8xf32, #tpu.memory_space<vmem>>, %arg5: memref<4x8x8xbf16, #tpu.memory_space<vmem>>, %arg6: memref<4x8x8xbf16, #tpu.memory_space<vmem>>) attributes {dimension_semantics = [#tpu.dimension_semantics<parallel>], iteration_bounds = array<i64: 1>, scalar_prefetch = 0 : i64, scratch_operands = 0 : i64, tpu.core_type = #tpu.core_type<tc>, window_params = [{transform_indices = @transform_0, window_bounds = array<i64: 8, 16>}, {pipeline_mode = #tpu.pipeline_mode<synchronous>, transform_indices = @transform_1, window_bounds = array<i64: 16, 96>}, {pipeline_mode = #tpu.pipeline_mode<synchronous>, transform_indices = @transform_2, window_bounds = array<i64: 1, 96>}, {transform_indices = @transform_3, window_bounds = array<i64: 4, 8, 8>}, {transform_indices = @transform_4, window_bounds = array<i64: 4, 8, 8>}, {transform_indices = @transform_5, window_bounds = array<i64: 4, 8, 8>}]} {
    %c0 = arith.constant 0 : index
    %c0_0 = arith.constant 0 : index
    %0 = vector.load %arg1[%c0, %c0_0] : memref<8x16xf32, #tpu.memory_space<vmem>>, vector<8x16xf32>
    %1 = arith.truncf %0 : vector<8x16xf32> to vector<8x16xbf16>
    %c0_1 = arith.constant 0 : index
    %c0_2 = arith.constant 0 : index
    %2 = vector.load %arg2[%c0_1, %c0_2] : memref<16x96xbf16, #tpu.memory_space<vmem>>, vector<16x96xbf16>
    %cst = arith.constant dense<0.000000e+00> : vector<8x96xf32>
    %3 = tpu.matmul %1, %2, %cst {dimension_numbers = #tpu.dot_dimension_numbers<[1], [0], [0], [1], [0, 0, 1, 1], [], []>} : vector<8x16xbf16>, vector<16x96xbf16>, vector<8x96xf32> -> vector<8x96xf32>
    %c0_3 = arith.constant 0 : index
    %c0_4 = arith.constant 0 : index
    %4 = vector.load %arg3[%c0_3, %c0_4] : memref<1x96xf32, #tpu.memory_space<vmem>>, vector<1x96xf32>
    %5 = vector.broadcast %4 : vector<1x96xf32> to vector<8x96xf32>
    %6 = arith.addf %3, %5 : vector<8x96xf32>
    %7 = vector.extract_strided_slice %6 {offsets = [0, 0], sizes = [8, 8], strides = [1, 1]} : vector<8x96xf32> to vector<8x8xf32>
    %c0_5 = arith.constant 0 : index
    %c0_6 = arith.constant 0 : index
    %c0_7 = arith.constant 0 : index
    %8 = vector.load %arg4[%c0_5, %c0_6, %c0_7] : memref<4x8x8xf32, #tpu.memory_space<vmem>>, vector<1x8x8xf32>
    %9 = vector.shape_cast %8 : vector<1x8x8xf32> to vector<8x8xf32>
    %10 = vector.shape_cast %7 : vector<8x8xf32> to vector<1x8x8xf32>
    tpu.vector_store %arg4[%c0_5, %c0_6, %c0_7], %10 {strides = array<i32>} : memref<4x8x8xf32, #tpu.memory_space<vmem>>, vector<1x8x8xf32>,
    %11 = vector.extract_strided_slice %6 {offsets = [0, 32], sizes = [8, 8], strides = [1, 1]} : vector<8x96xf32> to vector<8x8xf32>
    %12 = arith.truncf %11 : vector<8x8xf32> to vector<8x8xbf16>
    %c0_8 = arith.constant 0 : index
    %c0_9 = arith.constant 0 : index
    %c0_10 = arith.constant 0 : index
    %13 = vector.load %arg5[%c0_8, %c0_9, %c0_10] : memref<4x8x8xbf16, #tpu.memory_space<vmem>>, vector<1x8x8xbf16>
    %14 = vector.shape_cast %13 : vector<1x8x8xbf16> to vector<8x8xbf16>
    %15 = vector.shape_cast %12 : vector<8x8xbf16> to vector<1x8x8xbf16>
    tpu.vector_store %arg5[%c0_8, %c0_9, %c0_10], %15 {strides = array<i32>} : memref<4x8x8xbf16, #tpu.memory_space<vmem>>, vector<1x8x8xbf16>,
    %16 = vector.extract_strided_slice %6 {offsets = [0, 64], sizes = [8, 8], strides = [1, 1]} : vector<8x96xf32> to vector<8x8xf32>
    %17 = arith.truncf %16 : vector<8x8xf32> to vector<8x8xbf16>
    %c0_11 = arith.constant 0 : index
    %c0_12 = arith.constant 0 : index
    %c0_13 = arith.constant 0 : index
    %18 = vector.load %arg6[%c0_11, %c0_12, %c0_13] : memref<4x8x8xbf16, #tpu.memory_space<vmem>>, vector<1x8x8xbf16>
    %19 = vector.shape_cast %18 : vector<1x8x8xbf16> to vector<8x8xbf16>
    %20 = vector.shape_cast %17 : vector<8x8xbf16> to vector<1x8x8xbf16>
    tpu.vector_store %arg6[%c0_11, %c0_12, %c0_13], %20 {strides = array<i32>} : memref<4x8x8xbf16, #tpu.memory_space<vmem>>, vector<1x8x8xbf16>,
    %21 = vector.extract_strided_slice %6 {offsets = [0, 8], sizes = [8, 8], strides = [1, 1]} : vector<8x96xf32> to vector<8x8xf32>
    %c1 = arith.constant 1 : index
    %c0_14 = arith.constant 0 : index
    %c0_15 = arith.constant 0 : index
    %22 = vector.load %arg4[%c1, %c0_14, %c0_15] : memref<4x8x8xf32, #tpu.memory_space<vmem>>, vector<1x8x8xf32>
    %23 = vector.shape_cast %22 : vector<1x8x8xf32> to vector<8x8xf32>
    %24 = vector.shape_cast %21 : vector<8x8xf32> to vector<1x8x8xf32>
    tpu.vector_store %arg4[%c1, %c0_14, %c0_15], %24 {strides = array<i32>} : memref<4x8x8xf32, #tpu.memory_space<vmem>>, vector<1x8x8xf32>,
    %25 = vector.extract_strided_slice %6 {offsets = [0, 40], sizes = [8, 8], strides = [1, 1]} : vector<8x96xf32> to vector<8x8xf32>
    %26 = arith.truncf %25 : vector<8x8xf32> to vector<8x8xbf16>
    %c1_16 = arith.constant 1 : index
    %c0_17 = arith.constant 0 : index
    %c0_18 = arith.constant 0 : index
    %27 = vector.load %arg5[%c1_16, %c0_17, %c0_18] : memref<4x8x8xbf16, #tpu.memory_space<vmem>>, vector<1x8x8xbf16>
    %28 = vector.shape_cast %27 : vector<1x8x8xbf16> to vector<8x8xbf16>
    %29 = vector.shape_cast %26 : vector<8x8xbf16> to vector<1x8x8xbf16>
    tpu.vector_store %arg5[%c1_16, %c0_17, %c0_18], %29 {strides = array<i32>} : memref<4x8x8xbf16, #tpu.memory_space<vmem>>, vector<1x8x8xbf16>,
    %30 = vector.extract_strided_slice %6 {offsets = [0, 72], sizes = [8, 8], strides = [1, 1]} : vector<8x96xf32> to vector<8x8xf32>
    %31 = arith.truncf %30 : vector<8x8xf32> to vector<8x8xbf16>
    %c1_19 = arith.constant 1 : index
    %c0_20 = arith.constant 0 : index
    %c0_21 = arith.constant 0 : index
    %32 = vector.load %arg6[%c1_19, %c0_20, %c0_21] : memref<4x8x8xbf16, #tpu.memory_space<vmem>>, vector<1x8x8xbf16>
    %33 = vector.shape_cast %32 : vector<1x8x8xbf16> to vector<8x8xbf16>
    %34 = vector.shape_cast %31 : vector<8x8xbf16> to vector<1x8x8xbf16>
    tpu.vector_store %arg6[%c1_19, %c0_20, %c0_21], %34 {strides = array<i32>} : memref<4x8x8xbf16, #tpu.memory_space<vmem>>, vector<1x8x8xbf16>,
    %35 = vector.extract_strided_slice %6 {offsets = [0, 16], sizes = [8, 8], strides = [1, 1]} : vector<8x96xf32> to vector<8x8xf32>
    %c2 = arith.constant 2 : index
    %c0_22 = arith.constant 0 : index
    %c0_23 = arith.constant 0 : index
    %36 = vector.load %arg4[%c2, %c0_22, %c0_23] : memref<4x8x8xf32, #tpu.memory_space<vmem>>, vector<1x8x8xf32>
    %37 = vector.shape_cast %36 : vector<1x8x8xf32> to vector<8x8xf32>
    %38 = vector.shape_cast %35 : vector<8x8xf32> to vector<1x8x8xf32>
    tpu.vector_store %arg4[%c2, %c0_22, %c0_23], %38 {strides = array<i32>} : memref<4x8x8xf32, #tpu.memory_space<vmem>>, vector<1x8x8xf32>,
    %39 = vector.extract_strided_slice %6 {offsets = [0, 48], sizes = [8, 8], strides = [1, 1]} : vector<8x96xf32> to vector<8x8xf32>
    %40 = arith.truncf %39 : vector<8x8xf32> to vector<8x8xbf16>
    %c2_24 = arith.constant 2 : index
    %c0_25 = arith.constant 0 : index
    %c0_26 = arith.constant 0 : index
    %41 = vector.load %arg5[%c2_24, %c0_25, %c0_26] : memref<4x8x8xbf16, #tpu.memory_space<vmem>>, vector<1x8x8xbf16>
    %42 = vector.shape_cast %41 : vector<1x8x8xbf16> to vector<8x8xbf16>
    %43 = vector.shape_cast %40 : vector<8x8xbf16> to vector<1x8x8xbf16>
    tpu.vector_store %arg5[%c2_24, %c0_25, %c0_26], %43 {strides = array<i32>} : memref<4x8x8xbf16, #tpu.memory_space<vmem>>, vector<1x8x8xbf16>,
    %44 = vector.extract_strided_slice %6 {offsets = [0, 80], sizes = [8, 8], strides = [1, 1]} : vector<8x96xf32> to vector<8x8xf32>
    %45 = arith.truncf %44 : vector<8x8xf32> to vector<8x8xbf16>
    %c2_27 = arith.constant 2 : index
    %c0_28 = arith.constant 0 : index
    %c0_29 = arith.constant 0 : index
    %46 = vector.load %arg6[%c2_27, %c0_28, %c0_29] : memref<4x8x8xbf16, #tpu.memory_space<vmem>>, vector<1x8x8xbf16>
    %47 = vector.shape_cast %46 : vector<1x8x8xbf16> to vector<8x8xbf16>
    %48 = vector.shape_cast %45 : vector<8x8xbf16> to vector<1x8x8xbf16>
    tpu.vector_store %arg6[%c2_27, %c0_28, %c0_29], %48 {strides = array<i32>} : memref<4x8x8xbf16, #tpu.memory_space<vmem>>, vector<1x8x8xbf16>,
    %49 = vector.extract_strided_slice %6 {offsets = [0, 24], sizes = [8, 8], strides = [1, 1]} : vector<8x96xf32> to vector<8x8xf32>
    %c3 = arith.constant 3 : index
    %c0_30 = arith.constant 0 : index
    %c0_31 = arith.constant 0 : index
    %50 = vector.load %arg4[%c3, %c0_30, %c0_31] : memref<4x8x8xf32, #tpu.memory_space<vmem>>, vector<1x8x8xf32>
    %51 = vector.shape_cast %50 : vector<1x8x8xf32> to vector<8x8xf32>
    %52 = vector.shape_cast %49 : vector<8x8xf32> to vector<1x8x8xf32>
    tpu.vector_store %arg4[%c3, %c0_30, %c0_31], %52 {strides = array<i32>} : memref<4x8x8xf32, #tpu.memory_space<vmem>>, vector<1x8x8xf32>,
    %53 = vector.extract_strided_slice %6 {offsets = [0, 56], sizes = [8, 8], strides = [1, 1]} : vector<8x96xf32> to vector<8x8xf32>
    %54 = arith.truncf %53 : vector<8x8xf32> to vector<8x8xbf16>
    %c3_32 = arith.constant 3 : index
    %c0_33 = arith.constant 0 : index
    %c0_34 = arith.constant 0 : index
    %55 = vector.load %arg5[%c3_32, %c0_33, %c0_34] : memref<4x8x8xbf16, #tpu.memory_space<vmem>>, vector<1x8x8xbf16>
    %56 = vector.shape_cast %55 : vector<1x8x8xbf16> to vector<8x8xbf16>
    %57 = vector.shape_cast %54 : vector<8x8xbf16> to vector<1x8x8xbf16>
    tpu.vector_store %arg5[%c3_32, %c0_33, %c0_34], %57 {strides = array<i32>} : memref<4x8x8xbf16, #tpu.memory_space<vmem>>, vector<1x8x8xbf16>,
    %58 = vector.extract_strided_slice %6 {offsets = [0, 88], sizes = [8, 8], strides = [1, 1]} : vector<8x96xf32> to vector<8x8xf32>
    %59 = arith.truncf %58 : vector<8x8xf32> to vector<8x8xbf16>
    %c3_35 = arith.constant 3 : index
    %c0_36 = arith.constant 0 : index
    %c0_37 = arith.constant 0 : index
    %60 = vector.load %arg6[%c3_35, %c0_36, %c0_37] : memref<4x8x8xbf16, #tpu.memory_space<vmem>>, vector<1x8x8xbf16>
    %61 = vector.shape_cast %60 : vector<1x8x8xbf16> to vector<8x8xbf16>
    %62 = vector.shape_cast %59 : vector<8x8xbf16> to vector<1x8x8xbf16>
    tpu.vector_store %arg6[%c3_35, %c0_36, %c0_37], %62 {strides = array<i32>} : memref<4x8x8xbf16, #tpu.memory_space<vmem>>, vector<1x8x8xbf16>,
    return
  }
  func.func @transform_0(%arg0: i32) -> (i32, i32) {
    %c0_i32 = arith.constant 0 : i32
    %c0_i32_0 = arith.constant 0 : i32
    return %arg0, %c0_i32 : i32, i32
  }
  func.func @transform_1(%arg0: i32) -> (i32, i32) {
    %c0_i32 = arith.constant 0 : i32
    %c0_i32_0 = arith.constant 0 : i32
    %c0_i32_1 = arith.constant 0 : i32
    return %c0_i32, %c0_i32_0 : i32, i32
  }
  func.func @transform_2(%arg0: i32) -> (i32, i32) {
    %c0_i32 = arith.constant 0 : i32
    %c0_i32_0 = arith.constant 0 : i32
    %c0_i32_1 = arith.constant 0 : i32
    return %c0_i32, %c0_i32_0 : i32, i32
  }
  func.func @transform_3(%arg0: i32) -> (i32, i32, i32) {
    %c0_i32 = arith.constant 0 : i32
    %c0_i32_0 = arith.constant 0 : i32
    %c0_i32_1 = arith.constant 0 : i32
    return %c0_i32, %arg0, %c0_i32_0 : i32, i32, i32
  }
  func.func @transform_4(%arg0: i32) -> (i32, i32, i32) {
    %c0_i32 = arith.constant 0 : i32
    %c0_i32_0 = arith.constant 0 : i32
    %c0_i32_1 = arith.constant 0 : i32
    return %c0_i32, %arg0, %c0_i32_0 : i32, i32, i32
  }
  func.func @transform_5(%arg0: i32) -> (i32, i32, i32) {
    %c0_i32 = arith.constant 0 : i32
    %c0_i32_0 = arith.constant 0 : i32
    %c0_i32_1 = arith.constant 0 : i32
    return %c0_i32, %arg0, %c0_i32_0 : i32, i32, i32
  }
}

</mosaic_0001>

<bundles_post_ra>
// kernel: tpu_custom_call.1
= control target key start
LH: loop header
LB: loop body
LE: loop exit
PB: predicated region body
PF: predicated region fallthrough
CT: control target
= control target key end

     0   :  { %11 = vsyncpa [#allocation3], 0  ;;  %s520_s0 = inlined_call_operand.hbm [shape: f32[8,16], index: 0, kind: input, shape index: {}]   ;;  %s521_s1 = inlined_call_operand.hbm [shape: bf16[16,96], index: 1, kind: input, shape index: {}]   ;;  %s522_s2 = inlined_call_operand.vmem [shape: f32[1,96], index: 2, kind: input, shape index: {}]   ;;  %s523_s3 = inlined_call_operand.hbm [shape: f32[4,8,8], index: 3, kind: output, shape index: {0}]   ;;  %s524_s4 = inlined_call_operand.hbm [shape: bf16[4,8,8], index: 4, kind: output, shape index: {1}]   ;;  %s525_s5 = inlined_call_operand.hbm [shape: bf16[4,8,8], index: 5, kind: output, shape index: {2}]  }
   0x1   :  { %12 = vsyncpa [#allocation6], 0 }
   0x2   :  { %13 = vsyncpa [#allocation4], 0 }
   0x3   :  { %14 = vsyncpa [#allocation9], 0  ;;  %s370_s18 = smov [#allocation2]   ;;  %s371_s20 = smov [#allocation5]  }
   0x4   :  { %s21_s19 = sshll.u32 %s370_s18, 4  ;;  %s30_s21 = sshll.u32 %s371_s20, 4  ;;  %s22_s19 = int_to_ptr.vmem [resolvable:$true] %s21_s19  ;;  %s421_s21 = int_to_ptr.vmem [resolvable:$true] %s30_s21 }
   0x5   :  { %s252_s24 = scalar_lea.hbm %s520_s0, 128 }
   0x6   :  { %p253_p0 = scmp.ne.s32.totalorder %s520_s0, %s252_s24  ;;  %p256_p1 = scmp.lt.u32.totalorder %s252_s24, %s520_s0 }
   0x8   :  { %p258_p2 = pnand %p256_p1, %p253_p0 }
   0xa   :  { %261 = shalt.err (!%p258_p2)
}
   0xb   :  { %s262_s29 = scalar_lea.vmem %s22_s19, 128  ;;  %p267_p4 = scmp.lt.s32.totalorder %s22_s19, %s22_s19 }
   0xc   :  { %p263_p3 = scmp.ne.s32.totalorder %s22_s19, %s262_s29  ;;  %p268_p5 = scmp.lt.s32.totalorder %s262_s29, %s262_s29 }
   0xe   :  { %p269_p6 = por %p268_p5, %p267_p4 }
  0x10   :  { %p270_p7 = pnand %p269_p6, %p263_p3 }
  0x12   :  { %273 = shalt.err (!%p270_p7)
}
  0x13   :  { %24 = dma.hbm_to_vmem [thread:$0]  %s520_s0, 128, %s22_s19, [#allocation3]  }
  0x14   :  { %s274_s9 = scalar_lea.hbm %s521_s1, 128 }
  0x15   :  { %p275_p8 = scmp.ne.s32.totalorder %s521_s1, %s274_s9  ;;  %p278_p9 = scmp.lt.u32.totalorder %s274_s9, %s521_s1 }
  0x17   :  { %p280_p10 = pnand %p278_p9, %p275_p8 }
  0x19   :  { %283 = shalt.err (!%p280_p10)
}
  0x1a   :  { %s284_s14 = scalar_lea.vmem %s421_s21, 128  ;;  %p289_p12 = scmp.lt.s32.totalorder %s421_s21, %s421_s21 }
  0x1b   :  { %p285_p11 = scmp.ne.s32.totalorder %s421_s21, %s284_s14  ;;  %p290_p13 = scmp.lt.s32.totalorder %s284_s14, %s284_s14 }
  0x1d   :  { %p291_p0 = por %p290_p13, %p289_p12 }
  0x1f   :  { %p292_p1 = pnand %p291_p0, %p285_p11 }
  0x21   :  { %295 = shalt.err (!%p292_p1)
}
  0x22   :  { %s372_s0 = smov 64   ;;  %s373_s15 = smov 4  }
  0x23   :  { %36 = dma.hbm_to_vmem [thread:$0]  %s521_s1, 128, %s421_s21, [#allocation6], %s372_s0, %s372_s0, %s373_s15  }
  0x24   :  { %362 = dma.done.wait [#allocation3], 128  }
  0x25   :  { %363 = vsyncadd [#allocation3], 4294967168 }
  0x26   :  { %364 = dma.done.wait [#allocation6], 128  }
  0x27   :  { %365 = vsyncadd [#allocation6], 4294967168  ;;  %v374_v0 = vmov 0.0   ;;  %vm375_vm0 = vmmov 0   ;;  %v251_v1 = vld [vmem:[#allocation5] sm:$0xff]   ;;  %v46_v2 = vld [vmem:[#allocation2] sm:$0xff] }
  0x28   :  { %224 = vmatprep.subr.bf16.mxu0 %v374_v0  ;;  %226 = vmatprep.mubr.msk.bf16.mxu0 %vm375_vm0, %v374_v0  ;;  %v47_v3 = vpack.c.bf16 %v46_v2, %v46_v2  ;;  %vm63_vm1 = vcmask 130048   ;;  %v217_v4 = vld [vmem:[%s522_s2] ss:$0 sm:$0xff]  ;;  %vm107_vm2 = vcmask 64512   ;;  %s376_s1 = smov 120   ;;  %s377_s20 = smov 96  }
  0x29   :  { %225 = vmatpush3.bf16.msra.mxu0 %v251_v1  ;;  %s378_s21 = smov 112   ;;  %s379_s22 = smov 88   ;;  %vm116_vm3 = vcmask 60416  }
  0x2a   :  { %s380_s23 = smov 80   ;;  %s381_s2 = smov 72  }
  0x2b   :  { %s382_s24 = smov 56   ;;  %s383_s25 = smov 104  }
  0x2c   :  { %227 = vmatmul.mubr.msk.bf16.vlgmr.msra.gmra.mrb[0].mxu0 %vm63_vm1, %v47_v3  ;;  %s384_s26 = smov 48   ;;  %s385_s27 = smov 40  }
  0x2d   :  { %s386_s28 = smov [#allocation8]   ;;  %s387_s30 = smov [#allocation7]  }
  0x2e   :  { %s185_s29 = sshll.u32 %s386_s28, 4  ;;  %s173_s6 = sshll.u32 %s387_s30, 4  ;;  %s186_s29 = int_to_ptr.vmem [resolvable:$true] %s185_s29  ;;  %s467_s6 = int_to_ptr.vmem [resolvable:$true] %s173_s6 }
  0x2f   :  { %s296_s7 = scalar_lea.vmem %s186_s29, 256  ;;  %p301_p3 = scmp.lt.s32.totalorder %s186_s29, %s186_s29 }
  0x30   :  { %p297_p2 = scmp.ne.s32.totalorder %s186_s29, %s296_s7  ;;  %p302_p4 = scmp.lt.s32.totalorder %s296_s7, %s296_s7 }
  0x32   :  { %p303_p5 = por %p302_p4, %p301_p3 }
  0x34   :  { %p304_p6 = pnand %p303_p5, %p297_p2 }
  0xff   :  { %v101_v5 = vpop.f32.mrb[0].mxu0 }
 0x100   :  { %v102_v6 = vadd.f32 %v217_v4, %v101_v5  ;;  %v228_v7 = vpop.f32.mrb[1].mxu0 }
 0x101   :  { %v104_v8 = vpop.f32.mrb[2].mxu0 }
 0x102   :  { %v221_v9 = vpack.c.bf16 %v102_v6, %v102_v6  ;;  %123 = vrot.lane.b32.xlu1 %v102_v6, %s376_s1  ;;  %v229_v10 = vpop.f32.mrb[3].mxu0  ;;  %108 = vst.msk [vmem:[#allocation7] sm:$0xff] %vm107_vm2, %v102_v6 }
 0x104   :  { %113 = vrot.lane.b32.xlu0 %v221_v9, %s377_s20 }
 0x106   :  { %138 = vrot.lane.b32.xlu1 %v102_v6, %s378_s21 }
 0x108   :  { %128 = vrot.lane.b32.xlu0 %v221_v9, %s379_s22 }
 0x10a   :  { %143 = vrot.lane.b32.xlu1 %v221_v9, %s380_s23 }
 0x10c   :  { %118 = vrot.lane.b32.xlu0 %v221_v9, %s372_s0 }
 0x10e   :  { %158 = vrot.lane.b32.xlu1 %v221_v9, %s381_s2 }
 0x110   :  { %133 = vrot.lane.b32.xlu0 %v221_v9, %s382_s24 }
 0x112   :  { %153 = vrot.lane.b32.xlu1 %v102_v6, %s383_s25 }
 0x114   :  { %148 = vrot.lane.b32.xlu0 %v221_v9, %s384_s26 }
 0x118   :  { %163 = vrot.lane.b32.xlu0 %v221_v9, %s385_s27 }
 0x174   :  { %v124_v11 = vpop.permute.xlu1 %123 }
 0x175   :  { %127 = vst.msk [vmem:[#allocation7 + $0x8] sm:$0xff] %vm107_vm2, %v124_v11 }
 0x176   :  { %v114_v12 = vpop.permute.xlu0 %113 }
 0x177   :  { %117 = vst.msk [vmem:[#allocation8] sm:$0xf] %vm116_vm3, %v114_v12 }
 0x178   :  { %v139_v13 = vpop.permute.xlu1 %138 }
 0x179   :  { %142 = vst.msk [vmem:[#allocation7 + $0x10] sm:$0xff] %vm107_vm2, %v139_v13 }
 0x17a   :  { %v129_v14 = vpop.permute.xlu0 %128 }
 0x17b   :  { %132 = vst.msk [vmem:[#allocation8 + $0x4] sm:$0xf] %vm116_vm3, %v129_v14 }
 0x17c   :  { %v144_v15 = vpop.permute.xlu1 %143 }
 0x17d   :  { %147 = vst.msk [vmem:[#allocation8 + $0x8] sm:$0xf] %vm116_vm3, %v144_v15 }
 0x17e   :  { %v119_v16 = vpop.permute.xlu0 %118 }
 0x17f   :  { %121 = vst.msk [vmem:[#allocation10] sm:$0xf] %vm116_vm3, %v119_v16 }
 0x180   :  { %v159_v17 = vpop.permute.xlu1 %158 }
 0x181   :  { %162 = vst.msk [vmem:[#allocation8 + $0xc] sm:$0xf] %vm116_vm3, %v159_v17 }
 0x182   :  { %v134_v18 = vpop.permute.xlu0 %133 }
 0x183   :  { %307 = shalt.err (!%p304_p6)
}
 0x184   :  { %s308_s10 = scalar_lea.hbm %s524_s4, 256 }
 0x185   :  { %p309_p7 = scmp.ne.s32.totalorder %s524_s4, %s308_s10  ;;  %p312_p8 = scmp.lt.u32.totalorder %s308_s10, %s524_s4 }
 0x187   :  { %p314_p9 = pnand %p312_p8, %p309_p7 }
 0x189   :  { %317 = shalt.err (!%p314_p9)
}
 0x18a   :  { %191 = dma.vmem_to_hbm [thread:$0]  %s186_s29, 256, %s524_s4, [#allocation9], %s372_s0, %s372_s0, %s373_s15   ;;  %137 = vst.msk [vmem:[#allocation10 + $0x4] sm:$0xf] %vm116_vm3, %v134_v18  ;;  %v154_v19 = vpop.permute.xlu1 %153  ;;  %v149_v20 = vpop.permute.xlu0 %148 }
 0x18b   :  { %157 = vst.msk [vmem:[#allocation7 + $0x18] sm:$0xff] %vm107_vm2, %v154_v19  ;;  %s388_s18 = smov [#allocation10]   ;;  %s318_s1 = scalar_lea.vmem %s467_s6, 512 }
 0x18c   :  { %s197_s19 = sshll.u32 %s388_s18, 4  ;;  %p319_p10 = scmp.ne.s32.totalorder %s467_s6, %s318_s1  ;;  %s198_s19 = int_to_ptr.vmem [resolvable:$true] %s197_s19 }
 0x18d   :  { %p323_p11 = scmp.lt.s32.totalorder %s467_s6, %s467_s6  ;;  %p324_p12 = scmp.lt.s32.totalorder %s318_s1, %s318_s1 }
 0x18f   :  { %p325_p13 = por %p324_p12, %p323_p11 }
 0x191   :  { %p326_p0 = pnand %p325_p13, %p319_p10 }
 0x193   :  { %329 = shalt.err (!%p326_p0)
}
 0x194   :  { %s330_s4 = scalar_lea.hbm %s523_s3, 512 }
 0x195   :  { %p331_p1 = scmp.ne.s32.totalorder %s523_s3, %s330_s4  ;;  %p334_p2 = scmp.lt.u32.totalorder %s330_s4, %s523_s3 }
 0x197   :  { %p336_p3 = pnand %p334_p2, %p331_p1 }
 0x199   :  { %339 = shalt.err (!%p336_p3)
}
 0x19a   :  { %s389_s25 = smov 128   ;;  %s390_s26 = smov 8   ;;  %152 = vst.msk [vmem:[#allocation10 + $0x8] sm:$0xf] %vm116_vm3, %v149_v20  ;;  %v164_v21 = vpop.permute.xlu0 %163 }
 0x19b   :  { %179 = dma.vmem_to_hbm [thread:$0]  %s467_s6, 512, %s523_s3, [#allocation4], %s389_s25, %s389_s25, %s390_s26   ;;  %167 = vst.msk [vmem:[#allocation10 + $0xc] sm:$0xf] %vm116_vm3, %v164_v21 }
 0x19c   :  { %s340_s29 = scalar_lea.vmem %s198_s19, 256  ;;  %p345_p5 = scmp.lt.s32.totalorder %s198_s19, %s198_s19 }
 0x19d   :  { %p341_p4 = scmp.ne.s32.totalorder %s198_s19, %s340_s29  ;;  %p346_p6 = scmp.lt.s32.totalorder %s340_s29, %s340_s29 }
 0x19f   :  { %p347_p7 = por %p346_p6, %p345_p5 }
 0x1a1   :  { %p348_p8 = pnand %p347_p7, %p341_p4 }
 0x1a3   :  { %351 = shalt.err (!%p348_p8)
}
 0x1a4   :  { %s352_s8 = scalar_lea.hbm %s525_s5, 256 }
 0x1a5   :  { %p353_p9 = scmp.ne.s32.totalorder %s525_s5, %s352_s8  ;;  %p356_p10 = scmp.lt.u32.totalorder %s352_s8, %s525_s5 }
 0x1a7   :  { %p358_p11 = pnand %p356_p10, %p353_p9 }
 0x1a9   :  { %361 = shalt.err (!%p358_p11)
}
 0x1aa   :  { %203 = dma.vmem_to_hbm [thread:$0]  %s198_s19, 256, %s525_s5, [#allocation9], %s372_s0, %s372_s0, %s373_s15  }
 0x1ab   :  { %366 = dma.done.wait [#allocation4], 512  }
 0x1ac   :  { %367 = vsyncadd [#allocation4], 4294966784 }
 0x1ad   :  { %368 = dma.done.wait [#allocation9], 512  }
 0x1ae   :  { %369 = vsyncadd [#allocation9], 4294966784 }
 0x1af   :  { %213 = vsyncpa [#allocation3], 1 }
 0x1b0   :  { %214 = vsyncpa [#allocation6], 1 }
 0x1b1   :  { %215 = vsyncpa [#allocation4], 1 }
 0x1b2   :  { %216 = vsyncpa [#allocation9], 1 }

</bundles_post_ra>
